<compile_context>
chip_gen: v5e
topology: v5e:2x2
jax: 0.10.0
libtpu: 0.0.40
codegen_flags: <defaults>
</compile_context>

<pallas_src>
import jax
import jax.numpy as jnp
from jax.experimental import pallas as pl
from jax.experimental.pallas import tpu as pltpu


def _make_kernel(tb):
    def kernel(x_ref, w_ref, b_ref, o_ref):
        # x_ref: (TB, C, HW)   w_ref: (C, C) BN-folded conv weight
        # b_ref: (C, 1) BN-folded bias        o_ref: (TB, C, HW)
        w = w_ref[...]
        bias = b_ref[...]
        for t in range(tb):  # static unroll over the batch tile
            x = x_ref[t]                                             # (C, HW)
            z = jnp.dot(w, x, preferred_element_type=jnp.float32)    # (C, HW) on MXU
            o_ref[t] = jnp.maximum(z + bias + x, 0.0).astype(o_ref.dtype)
    return kernel


def _pick_tb(B, C, HW, itemsize=4, block_budget_bytes=2 * 1024 * 1024, cap=8):
    """Largest batch-tile dividing B that respects a per-block VMEM budget
    (in + out, double-buffered => ~4x block resident) and keeps >= 2 grid steps."""
    per_b = max(1, C * HW * itemsize)
    max_tb = max(1, min(cap, block_budget_bytes // per_b, B))
    tb = 1
    for d in range(1, max_tb + 1):
        if B % d == 0:
            tb = d
    # Prefer at least 2 grid steps: DMA/compute overlap + v7x megacore sharding.
    if B // tb == 1 and tb % 2 == 0:
        tb //= 2
    return tb


def residual_connection(x, conv_w, conv_b, gamma, beta, running_mean, running_var,
                        eps=1e-5):
    """x: (B, C, H, W) f32; conv_w: (C, C, 1, 1); conv_b/gamma/beta/mean/var: (C,).
    Returns relu(bn(conv1x1(x)) + x) with shape (B, C, H, W)."""
    B, C, H, W = x.shape
    O = conv_w.shape[0]
    assert O == C, "residual add requires out_channels == in_channels"
    HW = H * W

    # Fold eval-mode BatchNorm into the 1x1 conv (wrapper-side, tiny arrays).
    scale = gamma / jnp.sqrt(running_var + eps)                       # (C,)
    w_eff = conv_w.reshape(O, C) * scale[:, None]                     # (C, C)
    b_eff = (scale * (conv_b - running_mean) + beta).reshape(O, 1)    # (C, 1)

    x_flat = x.reshape(B, C, HW)                                      # free reshape
    tb = _pick_tb(B, C, HW, itemsize=x.dtype.itemsize)
    assert B % tb == 0
    grid = (B // tb,)

    out_flat = pl.pallas_call(
        _make_kernel(tb),
        out_shape=jax.ShapeDtypeStruct((B, C, HW), x.dtype),
        grid_spec=pltpu.PrefetchScalarGridSpec(
            num_scalar_prefetch=0,
            grid=grid,
            in_specs=[
                pl.BlockSpec((tb, C, HW), lambda i: (i, 0, 0)),
                pl.BlockSpec((O, C), lambda i: (0, 0)),
                pl.BlockSpec((O, 1), lambda i: (0, 0)),
            ],
            out_specs=pl.BlockSpec((tb, C, HW), lambda i: (i, 0, 0)),
        ),
        compiler_params=pltpu.CompilerParams(
            dimension_semantics=("parallel",),
            vmem_limit_bytes=32 * 1024 * 1024,  # above v5e's 16 MiB default, safe on v7x
        ),
        cost_estimate=pl.CostEstimate(
            flops=2 * B * O * C * HW + 3 * B * C * HW,
            transcendentals=0,
            bytes_accessed=(2 * B * C * HW + O * C + O) * x.dtype.itemsize,
        ),
    )(x_flat, w_eff, b_eff)

    return out_flat.reshape(B, C, H, W)


def _reference(x, conv_w, conv_b, gamma, beta, running_mean, running_var, eps=1e-5):
    # Pure-JAX reference of the PyTorch forward (eval-mode BN).
    O = conv_w.shape[0]
    C = conv_w.shape[1]
    w = conv_w.reshape(O, C)
    z = jnp.einsum('oc,bchw->bohw', w, x) + conv_b[None, :, None, None]
    z = (gamma[None, :, None, None] * (z - running_mean[None, :, None, None])
         / jnp.sqrt(running_var[None, :, None, None] + eps)
         + beta[None, :, None, None])
    return jnp.maximum(z + x, 0.0)


if __name__ == "__main__":
    B, C, H, W = 2, 16, 16, 16

    key = jax.random.PRNGKey(0)
    kx, kw, kb, kg, kbe, km, kv = jax.random.split(key, 7)

    x = jax.random.normal(kx, (B, C, H, W), dtype=jnp.float32)
    conv_w = jax.random.normal(kw, (C, C, 1, 1), dtype=jnp.float32) * (1.0 / jnp.sqrt(C))
    conv_b = 0.1 * jax.random.normal(kb, (C,), dtype=jnp.float32)
    gamma = 1.0 + 0.1 * jax.random.normal(kg, (C,), dtype=jnp.float32)
    beta = 0.1 * jax.random.normal(kbe, (C,), dtype=jnp.float32)
    running_mean = 0.1 * jax.random.normal(km, (C,), dtype=jnp.float32)
    running_var = jax.random.uniform(kv, (C,), dtype=jnp.float32, minval=0.5, maxval=1.5)

    out = residual_connection(x, conv_w, conv_b, gamma, beta, running_mean, running_var)
    out = jax.block_until_ready(out)

    ref = _reference(x, conv_w, conv_b, gamma, beta, running_mean, running_var)
    assert out.shape == (B, C, H, W)
    assert jnp.allclose(out, ref, atol=1e-4, rtol=1e-4), float(jnp.max(jnp.abs(out - ref)))

    print("KERNEL_OK")
</pallas_src>

<mosaic_0001>
module attributes {stable_mosaic.version = 11 : i64} {
  func.func @kernel(%arg0: i32, %arg1: memref<1x16x256xf32, #tpu.memory_space<vmem>>, %arg2: memref<16x16xf32, #tpu.memory_space<vmem>>, %arg3: memref<16x1xf32, #tpu.memory_space<vmem>>, %arg4: memref<1x16x256xf32, #tpu.memory_space<vmem>>) attributes {dimension_semantics = [#tpu.dimension_semantics<parallel>], iteration_bounds = array<i64: 2>, scalar_prefetch = 0 : i64, scratch_operands = 0 : i64, tpu.core_type = #tpu.core_type<tc>, window_params = [{transform_indices = @transform_0, window_bounds = array<i64: 1, 16, 256>}, {pipeline_mode = #tpu.pipeline_mode<synchronous>, transform_indices = @transform_1, window_bounds = array<i64: 16, 16>}, {pipeline_mode = #tpu.pipeline_mode<synchronous>, transform_indices = @transform_2, window_bounds = array<i64: 16, 1>}, {transform_indices = @transform_3, window_bounds = array<i64: 1, 16, 256>}]} {
    %c0 = arith.constant 0 : index
    %c0_0 = arith.constant 0 : index
    %0 = vector.load %arg2[%c0, %c0_0] : memref<16x16xf32, #tpu.memory_space<vmem>>, vector<16x16xf32>
    %c0_1 = arith.constant 0 : index
    %c0_2 = arith.constant 0 : index
    %1 = vector.load %arg3[%c0_1, %c0_2] : memref<16x1xf32, #tpu.memory_space<vmem>>, vector<16x1xf32>
    %c0_3 = arith.constant 0 : index
    %c0_4 = arith.constant 0 : index
    %c0_5 = arith.constant 0 : index
    %2 = vector.load %arg1[%c0_3, %c0_4, %c0_5] : memref<1x16x256xf32, #tpu.memory_space<vmem>>, vector<1x16x256xf32>
    %3 = vector.shape_cast %2 : vector<1x16x256xf32> to vector<16x256xf32>
    %cst = arith.constant dense<0.000000e+00> : vector<16x256xf32>
    %4 = tpu.matmul %0, %3, %cst {dimension_numbers = #tpu.dot_dimension_numbers<[1], [0], [0], [1], [0, 0, 1, 1], [], []>} : vector<16x16xf32>, vector<16x256xf32>, vector<16x256xf32> -> vector<16x256xf32>
    %5 = vector.broadcast %1 : vector<16x1xf32> to vector<16x256xf32>
    %6 = arith.addf %4, %5 : vector<16x256xf32>
    %7 = arith.addf %6, %3 : vector<16x256xf32>
    %cst_6 = arith.constant 0.000000e+00 : f32
    %8 = vector.broadcast %cst_6 : f32 to vector<16x256xf32>
    %9 = arith.maximumf %7, %8 : vector<16x256xf32>
    %c0_7 = arith.constant 0 : index
    %c0_8 = arith.constant 0 : index
    %c0_9 = arith.constant 0 : index
    %10 = vector.load %arg4[%c0_7, %c0_8, %c0_9] : memref<1x16x256xf32, #tpu.memory_space<vmem>>, vector<1x16x256xf32>
    %11 = vector.shape_cast %10 : vector<1x16x256xf32> to vector<16x256xf32>
    %12 = vector.shape_cast %9 : vector<16x256xf32> to vector<1x16x256xf32>
    tpu.vector_store %arg4[%c0_7, %c0_8, %c0_9], %12 {strides = array<i32>} : memref<1x16x256xf32, #tpu.memory_space<vmem>>, vector<1x16x256xf32>,
    return
  }
  func.func @transform_0(%arg0: i32) -> (i32, i32, i32) {
    %c0_i32 = arith.constant 0 : i32
    %c0_i32_0 = arith.constant 0 : i32
    %c0_i32_1 = arith.constant 0 : i32
    return %arg0, %c0_i32, %c0_i32_0 : i32, i32, i32
  }
  func.func @transform_1(%arg0: i32) -> (i32, i32) {
    %c0_i32 = arith.constant 0 : i32
    %c0_i32_0 = arith.constant 0 : i32
    %c0_i32_1 = arith.constant 0 : i32
    return %c0_i32, %c0_i32_0 : i32, i32
  }
  func.func @transform_2(%arg0: i32) -> (i32, i32) {
    %c0_i32 = arith.constant 0 : i32
    %c0_i32_0 = arith.constant 0 : i32
    %c0_i32_1 = arith.constant 0 : i32
    return %c0_i32, %c0_i32_0 : i32, i32
  }
  func.func @transform_3(%arg0: i32) -> (i32, i32, i32) {
    %c0_i32 = arith.constant 0 : i32
    %c0_i32_0 = arith.constant 0 : i32
    %c0_i32_1 = arith.constant 0 : i32
    return %arg0, %c0_i32, %c0_i32_0 : i32, i32, i32
  }
}

</mosaic_0001>

<bundles_post_ra>
// kernel: tpu_custom_call.1
= control target key start
LH: loop header
LB: loop body
LE: loop exit
PB: predicated region body
PF: predicated region fallthrough
CT: control target
= control target key end

     0   :  { %8 = vsyncpa [#allocation3], 0  ;;  %s705_s0 = inlined_call_operand.hbm [shape: f32[2,16,256], index: 0, kind: input, shape index: {}]   ;;  %s706_s1 = inlined_call_operand.vmem [shape: f32[16,16], index: 1, kind: input, shape index: {}]   ;;  %s707_s2 = inlined_call_operand.vmem [shape: f32[16,1], index: 2, kind: input, shape index: {}]   ;;  %s708_s3 = inlined_call_operand.hbm [shape: f32[2,16,256], index: 3, kind: output, shape index: {}]  }
   0x1   :  { %10 = vsyncpa [#allocation3 + $0x1], 0 }
   0x2   :  { %11 = vsyncpa [#allocation4], 0 }
   0x3   :  { %13 = vsyncpa [#allocation4 + $0x1], 0  ;;  %s562_s12 = smov 0   ;;  %s564_s13 = smov 0  }
   0x4   :  { %s566_s14 = smov 0   ;;  %s568_s15 = smov 0  }
   0x5 LB: > { %s583_s16 = sadd.s32 4294967295, %s535_s15   ;;  %s363_s17 = sadd.s32 4294967294, %s535_s15   ;;  %s535_s15 = sphi %s568_s15, %s718_s15   ;;  %s531_s14 = sphi %s566_s14, %s717_s14   ;;  %s527_s13 = sphi %s564_s13, %s716_s13   ;;  %s523_s12 = sphi %s562_s12, %s715_s12  }
   0x6   : > { %s587_s18 = sadd.s32 1, %s535_s15   ;;  %s26_s19 = sadd.s32 1, %s531_s14 }
   0x7   : > { %s23_s20 = ssub.s32 %s535_s15, %s587_s18  ;;  %p33_p0 = scmp.ne.s32.totalorder %s531_s14, %s527_s13 }
   0x8   : > { %p24_p1 = scmp.eq.s32.totalorder %s23_s20, 0  ;;  %p34_p2 = scmp.eq.s32.totalorder %s535_s15, 0 }
   0x9   : > { %p39_p3 = scmp.ne.s32.totalorder %s527_s13, %s523_s12  ;;  %p40_p4 = scmp.eq.s32.totalorder %s583_s16, 0 }
   0xa   : > { %s599_s21 = scalar_select %p24_p1, %s531_s14, %s26_s19  }
   0xb   : > { %p601_p5 = por %p34_p2, %p33_p0  ;;  %p605_p6 = por %p40_p4, %p39_p3 }
   0xc   : > { %p105_p7 = scmp.eq.s32.totalorder %s583_s16, 1  ;;  %p111_p8 = scmp.eq.s32.totalorder %s363_s17, 1 }
   0xd   : > { %p399_p10 = scmp.lt.s32.totalorder %s535_s15, 2  ;;  %s137_s26 = sand.u32 1, %s531_s14  }
   0xe   : > { %p612_p11 = por %p105_p7, %p33_p0  ;;  %p616_p12 = por %p111_p8, %p39_p3 }
   0xf   : > { %s381_s27 = sshll.u32 %s535_s15, 5  ;;  %s366_s28 = sshll.u32 %s137_s26, 5 }
  0x10   : > { %s146_s4 = scalar_lea.hbm %s705_s0, %s381_s27  ;;  %s141_s6 = scalar_lea.vmem [#allocation2], %s366_s28 }
  0x11   : > { %s147_s5 = sshll.u32 %s146_s4, 4  ;;  %s149_s7 = sshll.u32 %s141_s6, 4  ;;  %s148_s5 = int_to_ptr.hbm [resolvable:$true] %s147_s5  ;;  %s150_s7 = int_to_ptr.vmem [resolvable:$true] %s149_s7 }
  0x12   : > { %p627_p13 = pnand %p399_p10, %p601_p5  ;;  %p369_p0 = scmp.ge.s32.totalorder %s535_s15, 1 }
  0x13   : > { %p157_p1 = scmp.lt.s32.totalorder %s535_s15, 3  ;;  %s138_s9 = scalar_lea.sflag [#allocation3], %s137_s26 }
  0x14   : > { %s439_s10 = sshra.s32 %s148_s5, 4  ;;  %p443_p3 = pneg %p627_p13  ;;  %s440_s10 = int_to_ptr.hbm [resolvable:$true] %s439_s10 }
  0x15   : > { %s441_s11 = scalar_lea.hbm %s440_s10, 32  ;;  %s446_s20 = scalar_lea.hbm %s705_s0, 64 }
  0x16   : > { %p442_p2 = scmp.ne.s32.totalorder %s440_s10, %s441_s11  ;;  %p447_p5 = scmp.lt.s32.totalorder %s440_s10, %s705_s0 }
  0x17   : > { %p448_p8 = scmp.lt.s32.totalorder %s446_s20, %s441_s11 }
  0x18   : > { %p444_p4 = pnand %p443_p3, %p442_p2 }
  0x19   : > { %p449_p10 = por %p448_p8, %p447_p5 }
  0x1a   : > { %p445_p7 = pneg %p444_p4 }
  0x1c   : > { %p450_p9 = pnand %p449_p10, %p445_p7 }
  0x1e   : > { %453 = shalt.err (!%p450_p9)
}
  0x1f   : > { %s537_s26 = smov 256   ;;  %s538_s28 = smov 16  }
  0x20   : > { %394 = dma.hbm_to_vmem [thread:$0]  (!%p627_p13), %s148_s5, 512, %s150_s7, %s138_s9, %s537_s26, %s537_s26, %s538_s28  }
  0x21   : > { %p158_p2 = pnand %p369_p0, %p157_p1 }
  0x22   : > { %s648_s29 = sand.u32 (!%p158_p2), 1, %s527_s13  }
  0x23   : > { %161 = sbr.rel (%p158_p2) target bundleno = 190 (0xbe), region = 32  ;;  %s370_s30 = sshll.u32 (!%p158_p2), %s648_s29, 5 }
  0x24   : > { %s164_s4 = scalar_lea.sflag (!%p158_p2), [#allocation3], %s648_s29  ;;  %s167_s6 = scalar_lea.vmem (!%p158_p2), [#allocation2], %s370_s30 }
  0x28   : > { %514 = dma.done.wait (%p605_p6), %s164_s4, 512  }
  0x29   : > { %516 = vsyncadd (%p605_p6), %s164_s4, 4294966784  ;;  %v539_v0 = vmov 0   ;;  %v197_v1 = vld [vmem:[%s167_s6 + $0x10] sm:$0xff]  ;;  %v198_v2 = vld [vmem:[%s167_s6 + $0x18] sm:$0xff]  ;;  %vm209_vm0 = vcmask 130048   ;;  %s382_s19 = sshll.u32 %s583_s16, 5 }
  0x2a   : > { %438 = vset.pattern.permute.xlu0 %v539_v0  ;;  %v195_v3 = vld [vmem:[%s167_s6] sm:$0xff]  ;;  %230 = vmatpush.msra.mxu0 %v197_v1  ;;  %v196_v4 = vld [vmem:[%s167_s6 + $0x8] sm:$0xff]  ;;  %s286_s27 = scalar_lea.hbm %s708_s3, %s382_s19  ;;  %s190_s26 = scalar_lea.vmem [#allocation5], %s370_s30 }
  0x2b   : > { %383 = vmatpush.msra.mxu2 %v197_v1  ;;  %253 = vmatpush.msra.mxu1 %v198_v2  ;;  %v191_v5 = vld [vmem:[%s706_s1] sm:$0xff]  ;;  %v192_v6 = vld [vmem:[%s706_s1 + $0x8] sm:$0xff]  ;;  %s287_s28 = sshll.u32 %s190_s26, 4  ;;  %s289_s16 = sshll.u32 %s286_s27, 4  ;;  %s288_s28 = int_to_ptr.vmem [resolvable:$true] %s287_s28  ;;  %s290_s16 = int_to_ptr.hbm [resolvable:$true] %s289_s16 }
  0x2c   : > { %385 = vmatpush.msra.mxu3 %v198_v2  ;;  %231 = vmatpush.msra.mxu0 %v195_v3  ;;  %v193_v7 = vld [vmem:[%s707_s2] sm:$0xff]  ;;  %v194_v8 = vld [vmem:[%s707_s2 + $0x8] sm:$0xff]  ;;  %s275_s4 = scalar_lea.sflag [#allocation4], %s648_s29  ;;  %s483_s6 = sshra.s32 %s290_s16, 4  ;;  %s484_s6 = int_to_ptr.hbm [resolvable:$true] %s483_s6 }
  0x2d   : > { %384 = vmatpush.msra.mxu2 %v195_v3  ;;  %254 = vmatpush.msra.mxu1 %v196_v4  ;;  %s485_s30 = scalar_lea.hbm %s484_s6, 32  ;;  %s489_s8 = scalar_lea.hbm %s708_s3, 64 }
  0x2e   : > { %386 = vmatpush.msra.mxu3 %v196_v4  ;;  %372 = vmatmul.msk.f32.vlgmr.msra.gmra.mxu0 %vm209_vm0, %v191_v5  ;;  %p486_p6 = scmp.ne.s32.totalorder %s484_s6, %s485_s30  ;;  %p490_p0 = scmp.lt.s32.totalorder %s484_s6, %s708_s3 }
  0x2f   : > { %373 = vmatmul.msk.f32.vlgmr.msra.gmra.mxu2 %vm209_vm0, %v192_v6  ;;  %374 = vmatmul.msk.f32.vlgmr.msra.gmra.mxu1 %vm209_vm0, %v191_v5  ;;  %p491_p1 = scmp.lt.s32.totalorder %s489_s8, %s485_s30 }
  0x30   : > { %375 = vmatmul.msk.f32.vlgmr.msra.gmra.mxu3 %vm209_vm0, %v192_v6  ;;  %201 = vperm.xlu0 %438, %v193_v7   ;;  %p487_p9 = pnand %p486_p6, %p612_p11 }
  0x31   : > { %p492_p3 = por %p491_p1, %p490_p0 }
  0x32   : > { %p488_p13 = pneg %p487_p9 }
  0x34   : > { %p493_p4 = pnand %p492_p3, %p488_p13 }
  0x38   : > { %206 = vperm.xlu0 %438, %v194_v8  }
  0xa2   : > { %v202_v9 = vpop.permute.xlu0 %201 }
  0xaa   : > { %v207_v17 = vpop.permute.xlu0 %206 }
  0xab   : > { %v233_v10 = vpop.f32.mrf.mxu0 }
  0xac   : > { %v234_v11 = vadd.f32 %v233_v10, %v202_v9  ;;  %v256_v12 = vpop.f32.mrf.mxu1 }
  0xad   : > { %v257_v13 = vadd.f32 %v256_v12, %v202_v9 }
  0xae   : > { %v262_v14 = vadd.f32 %v234_v11, %v195_v3 }
  0xaf   : > { %v263_v15 = vadd.f32 %v257_v13, %v196_v4 }
  0xb0   : > { %v266_v16 = vmax.f32 %v262_v14, 0.0 }
  0xb1   : > { %v267_v18 = vmax.f32 %v263_v15, 0.0 }
  0xb2   : > { %v236_v19 = vpop.f32.mrf.mxu2  ;;  %270 = vst [vmem:[%s190_s26] sm:$0xff] %v266_v16 }
  0xb3   : > { %v237_v20 = vadd.f32 %v236_v19, %v207_v17  ;;  %v259_v21 = vpop.f32.mrf.mxu3  ;;  %271 = vst [vmem:[%s190_s26 + $0x8] sm:$0xff] %v267_v18 }
  0xb4   : > { %v260_v22 = vadd.f32 %v259_v21, %v207_v17 }
  0xb5   : > { %v264_v23 = vadd.f32 %v237_v20, %v197_v1 }
  0xb6   : > { %v265_v24 = vadd.f32 %v260_v22, %v198_v2 }
  0xb7   : > { %v268_v25 = vmax.f32 %v264_v23, 0.0 }
  0xb8   : > { %v269_v26 = vmax.f32 %v265_v24, 0.0 }
  0xb9   : > { %272 = vst [vmem:[%s190_s26 + $0x10] sm:$0xff] %v268_v25 }
  0xba   : > { %273 = vst [vmem:[%s190_s26 + $0x18] sm:$0xff] %v269_v26 }
  0xbb   : > { %496 = shalt.err (!%p493_p4)
}
  0xbc   : > { %s540_s29 = smov 256   ;;  %s541_s10 = smov 16  }
  0xbd   : > { %389 = dma.vmem_to_hbm [thread:$0]  (%p612_p11), %s288_s28, 512, %s290_s16, %s275_s4, %s540_s29, %s540_s29, %s541_s10  }
  0xbe PF: > { %s304_s11 = sand.u32 1, %s523_s12   ;;  %p714_p7 = scmp.ge.s32.totalorder %s535_s15, 2 }
  0xbf   : > { %s305_s17 = scalar_lea.sflag [#allocation4], %s304_s11 }
  0xc0   : > { %p396_p5 = pnand %p714_p7, %p616_p12 }
  0xc2   : > { %p397_p8 = pneg %p396_p5 }
  0xc4   : > { %518 = dma.done.wait (%p397_p8), %s305_s17, 512  }
  0xc5   : > { %520 = vsyncadd (%p397_p8), %s305_s17, 4294966784  ;;  %p16_p10 = scmp.ge.s32.totalorder %s587_s18, 4   ;;  %s715_s12 = smov %s527_s13 }
  0xc6   : > { %s716_s13 = smov %s531_s14  ;;  %s717_s14 = smov %s599_s21 }
  0xc7   : > { %s718_s15 = smov %s587_s18  ;;  %18 = sbr.rel (!%p16_p10) target bundleno = 5 (0x5), region = 77 }
  0xcc   :  { %311 = vsyncpa [#allocation3], 1 }
  0xcd   :  { %313 = vsyncpa [#allocation3 + $0x1], 1 }
  0xce   :  { %314 = vsyncpa [#allocation4], 1 }
  0xcf   :  { %316 = vsyncpa [#allocation4 + $0x1], 1 }

</bundles_post_ra>
